<compile_context>
chip_gen: v5e
topology: v5e:2x2
jax: 0.10.0
libtpu: 0.0.40
codegen_flags: <defaults>
</compile_context>

<pallas_src>
import functools

import jax
import jax.numpy as jnp
from jax.experimental import pallas as pl
from jax.experimental.pallas import tpu as pltpu

# Finite stand-in for -inf (plain Python float -> lowered as a literal, never a captured
# constant). Gives bit-identical softmax for any query row with >= 1 unmasked key and
# avoids NaN propagation inside the online-softmax recurrence.
_NEG_BIG = -1e30


def _xattn_kernel(has_mask, scale, *refs):
    if has_mask:
        (xdec_ref, xenc_ref, wq_ref, wk_ref, wv_ref, mask_ref,
         o_ref, q_sc, m_sc, l_sc, acc_sc) = refs
    else:
        (xdec_ref, xenc_ref, wq_ref, wk_ref, wv_ref,
         o_ref, q_sc, m_sc, l_sc, acc_sc) = refs
        mask_ref = None

    ki = pl.program_id(2)

    @pl.when(ki == 0)
    def _init():
        # Project this q tile once; it stays resident in VMEM across the whole k sweep.
        q = jnp.dot(xdec_ref[...], wq_ref[...], preferred_element_type=jnp.float32)
        q_sc[...] = q * scale
        m_sc[...] = jnp.full_like(m_sc, -jnp.inf)
        l_sc[...] = jnp.zeros_like(l_sc)
        acc_sc[...] = jnp.zeros_like(acc_sc)

    x_enc = xenc_ref[...]                                                  # (tk, E)
    k = jnp.dot(x_enc, wk_ref[...], preferred_element_type=jnp.float32)    # (tk, H)
    v = jnp.dot(x_enc, wv_ref[...], preferred_element_type=jnp.float32)    # (tk, H)

    # scores (tq, tk): contract on H for both operands -> no explicit transpose of k.
    s = jax.lax.dot_general(q_sc[...], k,
                            dimension_numbers=(((1,), (1,)), ((), ())),
                            preferred_element_type=jnp.float32)

    if mask_ref is not None:
        s = jnp.where(mask_ref[...] == 0, _NEG_BIG, s)

    # Online-softmax update (exact softmax once the k sweep completes).
    m_prev = m_sc[...]
    m_new = jnp.maximum(m_prev, s.max(axis=-1, keepdims=True))
    alpha = jnp.exp(m_prev - m_new)
    p = jnp.exp(s - m_new)
    l_sc[...] = alpha * l_sc[...] + p.sum(axis=-1, keepdims=True)
    acc_sc[...] = alpha * acc_sc[...] + jnp.dot(p, v, preferred_element_type=jnp.float32)
    m_sc[...] = m_new

    @pl.when(ki == pl.num_programs(2) - 1)
    def _finalize():
        # dropout(p=0.0) is the identity, so no masking of `wei` is required.
        o_ref[...] = (acc_sc[...] / l_sc[...]).astype(o_ref.dtype)


def _pick_tile(dim, preferred, multiple):
    """Largest tile <= preferred that divides `dim` and is a multiple of `multiple`;
    falls back to the full dim (always legal per the (8,128) full-extent escape)."""
    if dim <= preferred:
        return dim
    for t in range(preferred - preferred % multiple, 0, -multiple):
        if dim % t == 0:
            return t
    return dim


def cross_attention_head(x_encode, x_decode, wq, wk, wv, mask=None):
    """
    x_encode: [B, T_enc, E]      x_decode: [B, T_dec, E]
    wq/wk/wv: [E, H]             (== torch nn.Linear(E, H, bias=False).weight.T)
    mask:     broadcastable to [B, T_dec, T_enc]; positions where mask == 0 are excluded
              (same as torch masked_fill(mask == 0, -inf)).
    returns:  [B, T_dec, H]
    """
    B, Tk, E = x_encode.shape
    Bd, Tq, Ed = x_decode.shape
    assert (B, E) == (Bd, Ed), "x_encode / x_decode batch and embedding dims must match"
    H = wq.shape[1]
    scale = float(H) ** -0.5

    # Tile the sequence axes: full dim when short, aligned divisors (<=512) when long so
    # blocks satisfy the (8,128) rule and BlockSpec pipelining overlaps DMA with MXU work.
    tq = _pick_tile(Tq, 512, 8)
    tk = _pick_tile(Tk, 512, 128 if mask is not None else 8)
    grid = (B, Tq // tq, Tk // tk)

    in_specs = [
        pl.BlockSpec((None, tq, E), lambda b, qi, ki: (b, qi, 0)),   # x_decode tile
        pl.BlockSpec((None, tk, E), lambda b, qi, ki: (b, ki, 0)),   # x_encode tile
        pl.BlockSpec((E, H), lambda b, qi, ki: (0, 0)),              # Wq (resident)
        pl.BlockSpec((E, H), lambda b, qi, ki: (0, 0)),              # Wk (resident)
        pl.BlockSpec((E, H), lambda b, qi, ki: (0, 0)),              # Wv (resident)
    ]
    operands = [x_decode, x_encode, wq, wk, wv]

    has_mask = mask is not None
    if has_mask:
        mask_i = jnp.broadcast_to(mask, (B, Tq, Tk)).astype(jnp.int32)   # glue: layout only
        in_specs.append(pl.BlockSpec((None, tq, tk), lambda b, qi, ki: (b, qi, ki)))
        operands.append(mask_i)

    kernel = functools.partial(_xattn_kernel, has_mask, scale)

    return pl.pallas_call(
        kernel,
        out_shape=jax.ShapeDtypeStruct((B, Tq, H), x_decode.dtype),
        grid=grid,
        in_specs=in_specs,
        out_specs=pl.BlockSpec((None, tq, H), lambda b, qi, ki: (b, qi, 0)),
        scratch_shapes=[
            pltpu.VMEM((tq, H), jnp.float32),   # scaled Q projection (resident over k)
            pltpu.VMEM((tq, 1), jnp.float32),   # running max
            pltpu.VMEM((tq, 1), jnp.float32),   # running denominator
            pltpu.VMEM((tq, H), jnp.float32),   # running numerator
        ],
        compiler_params=pltpu.CompilerParams(
            dimension_semantics=("parallel", "parallel", "arbitrary"),
        ),
    )(*operands)


def cross_attention_ref(x_encode, x_decode, wq, wk, wv, mask=None):
    """Pure-JAX reference, mirroring the PyTorch forward exactly."""
    k = x_encode @ wk
    q = x_decode @ wq
    wei = jnp.einsum("btd,bsd->bts", q, k) * (k.shape[-1] ** -0.5)
    if mask is not None:
        wei = jnp.where(mask == 0, -jnp.inf, wei)
    wei = jax.nn.softmax(wei, axis=-1)
    v = x_encode @ wv
    return jnp.einsum("bts,bsd->btd", wei, v)


if __name__ == "__main__":
    # Small shapes consistent with the module: batch=2, seq_enc=16, seq_dec=8,
    # n_embd=32, head_size=16.
    B, T_ENC, T_DEC, E, H = 2, 16, 8, 32, 16

    key = jax.random.PRNGKey(0)
    k0, k1, k2, k3, k4 = jax.random.split(key, 5)
    x_encode = jax.random.normal(k0, (B, T_ENC, E), dtype=jnp.float32)
    x_decode = jax.random.normal(k1, (B, T_DEC, E), dtype=jnp.float32)
    wq = jax.random.normal(k2, (E, H), dtype=jnp.float32) * 0.1
    wk = jax.random.normal(k3, (E, H), dtype=jnp.float32) * 0.1
    wv = jax.random.normal(k4, (E, H), dtype=jnp.float32) * 0.1

    # Mask: each decode position sees a prefix of encode positions (>= 1 valid key/row).
    q_idx = jnp.arange(T_DEC)[:, None]
    k_idx = jnp.arange(T_ENC)[None, :]
    mask = jnp.broadcast_to((k_idx <= 2 * q_idx + 1).astype(jnp.int32)[None],
                            (B, T_DEC, T_ENC))

    out_nomask = jax.block_until_ready(
        cross_attention_head(x_encode, x_decode, wq, wk, wv))
    out_masked = jax.block_until_ready(
        cross_attention_head(x_encode, x_decode, wq, wk, wv, mask))

    ref_nomask = cross_attention_ref(x_encode, x_decode, wq, wk, wv)
    ref_masked = cross_attention_ref(x_encode, x_decode, wq, wk, wv, mask)

    assert out_nomask.shape == (B, T_DEC, H)
    assert out_masked.shape == (B, T_DEC, H)
    assert jnp.allclose(out_nomask, ref_nomask, atol=1e-5, rtol=1e-5)
    assert jnp.allclose(out_masked, ref_masked, atol=1e-5, rtol=1e-5)

    print("KERNEL_OK")
</pallas_src>

<mosaic_0001>
module attributes {stable_mosaic.version = 11 : i64} {
  func.func @_xattn_kernel(%arg0: i32, %arg1: i32, %arg2: i32, %arg3: memref<1x8x32xf32, #tpu.memory_space<vmem>>, %arg4: memref<1x16x32xf32, #tpu.memory_space<vmem>>, %arg5: memref<32x16xf32, #tpu.memory_space<vmem>>, %arg6: memref<32x16xf32, #tpu.memory_space<vmem>>, %arg7: memref<32x16xf32, #tpu.memory_space<vmem>>, %arg8: memref<1x8x16xf32, #tpu.memory_space<vmem>>, %arg9: memref<8x16xf32, #tpu.memory_space<vmem>>, %arg10: memref<8x1xf32, #tpu.memory_space<vmem>>, %arg11: memref<8x1xf32, #tpu.memory_space<vmem>>, %arg12: memref<8x16xf32, #tpu.memory_space<vmem>>) attributes {dimension_semantics = [#tpu.dimension_semantics<parallel>, #tpu.dimension_semantics<parallel>, #tpu.dimension_semantics<arbitrary>], iteration_bounds = array<i64: 2, 1, 1>, scalar_prefetch = 0 : i64, scratch_operands = 4 : i64, tpu.core_type = #tpu.core_type<tc>, window_params = [{transform_indices = @transform_0, window_bounds = array<i64: 1, 8, 32>}, {transform_indices = @transform_1, window_bounds = array<i64: 1, 16, 32>}, {pipeline_mode = #tpu.pipeline_mode<synchronous>, transform_indices = @transform_2, window_bounds = array<i64: 32, 16>}, {pipeline_mode = #tpu.pipeline_mode<synchronous>, transform_indices = @transform_3, window_bounds = array<i64: 32, 16>}, {pipeline_mode = #tpu.pipeline_mode<synchronous>, transform_indices = @transform_4, window_bounds = array<i64: 32, 16>}, {transform_indices = @transform_5, window_bounds = array<i64: 1, 8, 16>}]} {
    %c0_i32 = arith.constant 0 : i32
    %0 = arith.cmpi eq, %arg2, %c0_i32 : i32
    %1 = arith.extui %0 : i1 to i32
    %c0_i32_0 = arith.constant 0 : i32
    %2 = arith.cmpi ne, %1, %c0_i32_0 : i32
    scf.if %2 {
      %c0_28 = arith.constant 0 : index
      %c0_29 = arith.constant 0 : index
      %c0_30 = arith.constant 0 : index
      %36 = vector.load %arg3[%c0_28, %c0_29, %c0_30] : memref<1x8x32xf32, #tpu.memory_space<vmem>>, vector<1x8x32xf32>
      %37 = vector.shape_cast %36 : vector<1x8x32xf32> to vector<8x32xf32>
      %c0_31 = arith.constant 0 : index
      %c0_32 = arith.constant 0 : index
      %38 = vector.load %arg5[%c0_31, %c0_32] : memref<32x16xf32, #tpu.memory_space<vmem>>, vector<32x16xf32>
      %cst_33 = arith.constant dense<0.000000e+00> : vector<8x16xf32>
      %39 = tpu.matmul %37, %38, %cst_33 {dimension_numbers = #tpu.dot_dimension_numbers<[1], [0], [0], [1], [0, 0, 1, 1], [], []>} : vector<8x32xf32>, vector<32x16xf32>, vector<8x16xf32> -> vector<8x16xf32>
      %cst_34 = arith.constant 2.500000e-01 : f32
      %40 = vector.broadcast %cst_34 : f32 to vector<8x16xf32>
      %41 = arith.mulf %39, %40 : vector<8x16xf32>
      %c0_35 = arith.constant 0 : index
      %c0_36 = arith.constant 0 : index
      %42 = vector.load %arg9[%c0_35, %c0_36] : memref<8x16xf32, #tpu.memory_space<vmem>>, vector<8x16xf32>
      tpu.vector_store %arg9[%c0_35, %c0_36], %41 {strides = array<i32>} : memref<8x16xf32, #tpu.memory_space<vmem>>, vector<8x16xf32>,
      %cst_37 = arith.constant 0xFF800000 : f32
      %43 = vector.broadcast %cst_37 : f32 to vector<8x1xf32>
      %c0_38 = arith.constant 0 : index
      %c0_39 = arith.constant 0 : index
      %44 = vector.load %arg10[%c0_38, %c0_39] : memref<8x1xf32, #tpu.memory_space<vmem>>, vector<8x1xf32>
      tpu.vector_store %arg10[%c0_38, %c0_39], %43 {strides = array<i32>} : memref<8x1xf32, #tpu.memory_space<vmem>>, vector<8x1xf32>,
      %cst_40 = arith.constant 0.000000e+00 : f32
      %45 = vector.broadcast %cst_40 : f32 to vector<8x1xf32>
      %c0_41 = arith.constant 0 : index
      %c0_42 = arith.constant 0 : index
      %46 = vector.load %arg11[%c0_41, %c0_42] : memref<8x1xf32, #tpu.memory_space<vmem>>, vector<8x1xf32>
      tpu.vector_store %arg11[%c0_41, %c0_42], %45 {strides = array<i32>} : memref<8x1xf32, #tpu.memory_space<vmem>>, vector<8x1xf32>,
      %cst_43 = arith.constant 0.000000e+00 : f32
      %47 = vector.broadcast %cst_43 : f32 to vector<8x16xf32>
      %c0_44 = arith.constant 0 : index
      %c0_45 = arith.constant 0 : index
      %48 = vector.load %arg12[%c0_44, %c0_45] : memref<8x16xf32, #tpu.memory_space<vmem>>, vector<8x16xf32>
      tpu.vector_store %arg12[%c0_44, %c0_45], %47 {strides = array<i32>} : memref<8x16xf32, #tpu.memory_space<vmem>>, vector<8x16xf32>,
    } else {
    }
    %c0 = arith.constant 0 : index
    %c0_1 = arith.constant 0 : index
    %c0_2 = arith.constant 0 : index
    %3 = vector.load %arg4[%c0, %c0_1, %c0_2] : memref<1x16x32xf32, #tpu.memory_space<vmem>>, vector<1x16x32xf32>
    %4 = vector.shape_cast %3 : vector<1x16x32xf32> to vector<16x32xf32>
    %c0_3 = arith.constant 0 : index
    %c0_4 = arith.constant 0 : index
    %5 = vector.load %arg6[%c0_3, %c0_4] : memref<32x16xf32, #tpu.memory_space<vmem>>, vector<32x16xf32>
    %cst = arith.constant dense<0.000000e+00> : vector<16x16xf32>
    %6 = tpu.matmul %4, %5, %cst {dimension_numbers = #tpu.dot_dimension_numbers<[1], [0], [0], [1], [0, 0, 1, 1], [], []>} : vector<16x32xf32>, vector<32x16xf32>, vector<16x16xf32> -> vector<16x16xf32>
    %c0_5 = arith.constant 0 : index
    %c0_6 = arith.constant 0 : index
    %7 = vector.load %arg7[%c0_5, %c0_6] : memref<32x16xf32, #tpu.memory_space<vmem>>, vector<32x16xf32>
    %cst_7 = arith.constant dense<0.000000e+00> : vector<16x16xf32>
    %8 = tpu.matmul %4, %7, %cst_7 {dimension_numbers = #tpu.dot_dimension_numbers<[1], [0], [0], [1], [0, 0, 1, 1], [], []>} : vector<16x32xf32>, vector<32x16xf32>, vector<16x16xf32> -> vector<16x16xf32>
    %c0_8 = arith.constant 0 : index
    %c0_9 = arith.constant 0 : index
    %9 = vector.load %arg9[%c0_8, %c0_9] : memref<8x16xf32, #tpu.memory_space<vmem>>, vector<8x16xf32>
    %cst_10 = arith.constant dense<0.000000e+00> : vector<8x16xf32>
    %10 = tpu.matmul %9, %6, %cst_10 {dimension_numbers = #tpu.dot_dimension_numbers<[1], [1], [0], [0], [0, 0, 1, 0], [], []>} : vector<8x16xf32>, vector<16x16xf32>, vector<8x16xf32> -> vector<8x16xf32>
    %c0_11 = arith.constant 0 : index
    %c0_12 = arith.constant 0 : index
    %11 = vector.load %arg10[%c0_11, %c0_12] : memref<8x1xf32, #tpu.memory_space<vmem>>, vector<8x1xf32>
    %cst_13 = arith.constant dense<0xFF800000> : vector<8xf32>
    %12 = vector.multi_reduction <maximumf>, %10, %cst_13 [1] : vector<8x16xf32> to vector<8xf32>
    %13 = vector.shape_cast %12 : vector<8xf32> to vector<8x1xf32>
    %14 = arith.maximumf %11, %13 : vector<8x1xf32>
    %15 = arith.subf %11, %14 : vector<8x1xf32>
    %16 = math.exp %15 : vector<8x1xf32>
    %17 = vector.broadcast %14 : vector<8x1xf32> to vector<8x16xf32>
    %18 = arith.subf %10, %17 : vector<8x16xf32>
    %19 = math.exp %18 : vector<8x16xf32>
    %c0_14 = arith.constant 0 : index
    %c0_15 = arith.constant 0 : index
    %20 = vector.load %arg11[%c0_14, %c0_15] : memref<8x1xf32, #tpu.memory_space<vmem>>, vector<8x1xf32>
    %21 = arith.mulf %16, %20 : vector<8x1xf32>
    %cst_16 = arith.constant dense<0.000000e+00> : vector<8xf32>
    %22 = vector.multi_reduction <add>, %19, %cst_16 [1] : vector<8x16xf32> to vector<8xf32>
    %23 = vector.shape_cast %22 : vector<8xf32> to vector<8x1xf32>
    %24 = arith.addf %21, %23 : vector<8x1xf32>
    %c0_17 = arith.constant 0 : index
    %c0_18 = arith.constant 0 : index
    %25 = vector.load %arg11[%c0_17, %c0_18] : memref<8x1xf32, #tpu.memory_space<vmem>>, vector<8x1xf32>
    tpu.vector_store %arg11[%c0_17, %c0_18], %24 {strides = array<i32>} : memref<8x1xf32, #tpu.memory_space<vmem>>, vector<8x1xf32>,
    %c0_19 = arith.constant 0 : index
    %c0_20 = arith.constant 0 : index
    %26 = vector.load %arg12[%c0_19, %c0_20] : memref<8x16xf32, #tpu.memory_space<vmem>>, vector<8x16xf32>
    %27 = vector.broadcast %16 : vector<8x1xf32> to vector<8x16xf32>
    %28 = arith.mulf %27, %26 : vector<8x16xf32>
    %cst_21 = arith.constant dense<0.000000e+00> : vector<8x16xf32>
    %29 = tpu.matmul %19, %8, %cst_21 {dimension_numbers = #tpu.dot_dimension_numbers<[1], [0], [0], [1], [0, 0, 1, 1], [], []>} : vector<8x16xf32>, vector<16x16xf32>, vector<8x16xf32> -> vector<8x16xf32>
    %30 = arith.addf %28, %29 : vector<8x16xf32>
    %c0_22 = arith.constant 0 : index
    %c0_23 = arith.constant 0 : index
    %31 = vector.load %arg12[%c0_22, %c0_23] : memref<8x16xf32, #tpu.memory_space<vmem>>, vector<8x16xf32>
    tpu.vector_store %arg12[%c0_22, %c0_23], %30 {strides = array<i32>} : memref<8x16xf32, #tpu.memory_space<vmem>>, vector<8x16xf32>,
    %c0_24 = arith.constant 0 : index
    %c0_25 = arith.constant 0 : index
    %32 = vector.load %arg10[%c0_24, %c0_25] : memref<8x1xf32, #tpu.memory_space<vmem>>, vector<8x1xf32>
    tpu.vector_store %arg10[%c0_24, %c0_25], %14 {strides = array<i32>} : memref<8x1xf32, #tpu.memory_space<vmem>>, vector<8x1xf32>,
    %c0_i32_26 = arith.constant 0 : i32
    %33 = arith.cmpi eq, %arg2, %c0_i32_26 : i32
    %34 = arith.extui %33 : i1 to i32
    %c0_i32_27 = arith.constant 0 : i32
    %35 = arith.cmpi ne, %34, %c0_i32_27 : i32
    scf.if %35 {
      %c0_28 = arith.constant 0 : index
      %c0_29 = arith.constant 0 : index
      %36 = vector.load %arg12[%c0_28, %c0_29] : memref<8x16xf32, #tpu.memory_space<vmem>>, vector<8x16xf32>
      %c0_30 = arith.constant 0 : index
      %c0_31 = arith.constant 0 : index
      %37 = vector.load %arg11[%c0_30, %c0_31] : memref<8x1xf32, #tpu.memory_space<vmem>>, vector<8x1xf32>
      %38 = vector.broadcast %37 : vector<8x1xf32> to vector<8x16xf32>
      %39 = arith.divf %36, %38 : vector<8x16xf32>
      %c0_32 = arith.constant 0 : index
      %c0_33 = arith.constant 0 : index
      %c0_34 = arith.constant 0 : index
      %40 = vector.load %arg8[%c0_32, %c0_33, %c0_34] : memref<1x8x16xf32, #tpu.memory_space<vmem>>, vector<1x8x16xf32>
      %41 = vector.shape_cast %40 : vector<1x8x16xf32> to vector<8x16xf32>
      %42 = vector.shape_cast %39 : vector<8x16xf32> to vector<1x8x16xf32>
      tpu.vector_store %arg8[%c0_32, %c0_33, %c0_34], %42 {strides = array<i32>} : memref<1x8x16xf32, #tpu.memory_space<vmem>>, vector<1x8x16xf32>,
    } else {
    }
    return
  }
  func.func @transform_0(%arg0: i32, %arg1: i32, %arg2: i32) -> (i32, i32, i32) {
    %c0_i32 = arith.constant 0 : i32
    %c0_i32_0 = arith.constant 0 : i32
    return %arg0, %arg1, %c0_i32 : i32, i32, i32
  }
  func.func @transform_1(%arg0: i32, %arg1: i32, %arg2: i32) -> (i32, i32, i32) {
    %c0_i32 = arith.constant 0 : i32
    %c0_i32_0 = arith.constant 0 : i32
    return %arg0, %arg2, %c0_i32 : i32, i32, i32
  }
  func.func @transform_2(%arg0: i32, %arg1: i32, %arg2: i32) -> (i32, i32) {
    %c0_i32 = arith.constant 0 : i32
    %c0_i32_0 = arith.constant 0 : i32
    %c0_i32_1 = arith.constant 0 : i32
    return %c0_i32, %c0_i32_0 : i32, i32
  }
  func.func @transform_3(%arg0: i32, %arg1: i32, %arg2: i32) -> (i32, i32) {
    %c0_i32 = arith.constant 0 : i32
    %c0_i32_0 = arith.constant 0 : i32
    %c0_i32_1 = arith.constant 0 : i32
    return %c0_i32, %c0_i32_0 : i32, i32
  }
  func.func @transform_4(%arg0: i32, %arg1: i32, %arg2: i32) -> (i32, i32) {
    %c0_i32 = arith.constant 0 : i32
    %c0_i32_0 = arith.constant 0 : i32
    %c0_i32_1 = arith.constant 0 : i32
    return %c0_i32, %c0_i32_0 : i32, i32
  }
  func.func @transform_5(%arg0: i32, %arg1: i32, %arg2: i32) -> (i32, i32, i32) {
    %c0_i32 = arith.constant 0 : i32
    %c0_i32_0 = arith.constant 0 : i32
    return %arg0, %arg1, %c0_i32 : i32, i32, i32
  }
}

</mosaic_0001>

<bundles_post_ra>
// kernel: tpu_custom_call.1
= control target key start
LH: loop header
LB: loop body
LE: loop exit
PB: predicated region body
PF: predicated region fallthrough
CT: control target
= control target key end

     0   :  { %10 = vsyncpa [#allocation7], 0  ;;  %s972_s0 = inlined_call_operand.vmem [shape: f32[2,8,32], index: 0, kind: input, shape index: {}]   ;;  %s973_s1 = inlined_call_operand.vmem [shape: f32[2,16,32], index: 1, kind: input, shape index: {}]   ;;  %s974_s2 = inlined_call_operand.vmem [shape: f32[32,16], index: 2, kind: input, shape index: {}]   ;;  %s975_s3 = inlined_call_operand.vmem [shape: f32[32,16], index: 3, kind: input, shape index: {}]   ;;  %s976_s4 = inlined_call_operand.vmem [shape: f32[32,16], index: 4, kind: input, shape index: {}]   ;;  %s977_s5 = inlined_call_operand.hbm [shape: f32[2,8,16], index: 5, kind: output, shape index: {}]  }
   0x1   :  { %12 = vsyncpa [#allocation7 + $0x1], 0  ;;  %s817_s18 = smov 0   ;;  %s819_s19 = smov 0  }
   0x2   :  { %s821_s20 = smov 0   ;;  %s823_s21 = smov 0  }
   0x3   :  { %s825_s22 = smov 0   ;;  %s827_s23 = smov 0  }
   0x4 LB: > { %s614_s24 = sadd.s32 4294967295, %s782_s23   ;;  %s615_s25 = sadd.s32 4294967294, %s782_s23   ;;  %s782_s23 = sphi %s827_s23, %s18_s23   ;;  %s778_s22 = sphi %s825_s22, %s984_s22   ;;  %s774_s21 = sphi %s823_s21, %s983_s21   ;;  %s770_s20 = sphi %s821_s20, %s982_s20   ;;  %s766_s19 = sphi %s819_s19, %s981_s19   ;;  %s762_s18 = sphi %s817_s18, %s980_s18  }
   0x5   : > { %s37_s26 = sadd.s32 1, %s778_s22  ;;  %s165_s27 = sadd.s32 1, %s770_s20 }
   0x6   : > { %p39_p0 = scmp.ge.s32.totalorder %s37_s26, 2  ;;  %p175_p1 = scmp.ne.s32.totalorder %s770_s20, %s766_s19 }
   0x7   : > { %p176_p2 = scmp.eq.s32.totalorder %s614_s24, 1  ;;  %p181_p3 = scmp.ne.s32.totalorder %s766_s19, %s762_s18 }
   0x8   : > { %s986_s26 = smov (%p39_p0, %s37_s26), 0  ;;  %p182_p5 = scmp.eq.s32.totalorder %s615_s25, 1 }
   0x9   : > { %p857_p4 = por %p176_p2, %p175_p1  ;;  %s160_s29 = ssub.s32 %s778_s22, %s986_s26 }
   0xa   : > { %p618_p6 = scmp.ge.s32.totalorder %s782_s23, 1  ;;  %p163_p7 = scmp.eq.s32.totalorder %s160_s29, 0 }
   0xb   : > { %p864_p8 = por %p182_p5, %p181_p3  ;;  %p232_p9 = scmp.lt.s32.totalorder %s782_s23, 3 }
   0xc   : > { %s870_s6 = scalar_select %p163_p7, %s770_s20, %s165_s27  }
   0xd   : > { %p233_p10 = pnand %p618_p6, %p232_p9 }
   0xe   : > { %p271_p11 = scmp.lt.s32.totalorder (!%p233_p10), %s774_s21, 1  ;;  %s268_s10 = sand.u32 (!%p233_p10), 1, %s766_s19  }
   0xf   : > { %236 = sbr.rel (%p233_p10) target bundleno = 810 (0x32a), region = 40  ;;  %s633_s12 = sshll.u32 (!%p233_p10), %s774_s21, 3 }
  0x10   : > { %s517_s15 = scalar_lea.hbm (!%p233_p10), %s977_s5, %s633_s12 }
  0x11   : > { %s521_s24 = sshll.u32 (!%p233_p10), %s517_s15, 4  ;;  %s522_s24 = int_to_ptr.hbm [resolvable:$true] %s521_s24 }
  0x12   : > { %s718_s25 = sshra.s32 (!%p233_p10), %s522_s24, 4  ;;  %s719_s25 = int_to_ptr.hbm [resolvable:$true] %s718_s25 }
  0x13   : > { %s720_s27 = scalar_lea.hbm (!%p233_p10), %s719_s25, 8  ;;  %p725_p1 = scmp.lt.s32.totalorder (!%p233_p10), %s719_s25, %s977_s5 }
  0x14   : > { %v333_v0 = vld [vmem:[%s975_s3 + $0x18] sm:$0xff]  ;;  %v332_v1 = vld [vmem:[%s975_s3 + $0x10] sm:$0xff]  ;;  %v331_v4 = vld [vmem:[%s975_s3 + $0x8] sm:$0xff]  ;;  %s272_s17 = scalar_select %p271_p11, %s774_s21, 1  ;;  %vm297_vm0 = vcmask 261120   ;;  %vm322_vm1 = vcmask 130048  }
  0x15   : > { %353 = vmatpush.msra.mxu1 %v333_v0  ;;  %v296_v2 = vld [vmem:[%s974_s2 + $0x18] sm:$0xff]  ;;  %v295_v3 = vld [vmem:[%s974_s2 + $0x10] sm:$0xff]  ;;  %v294_v5 = vld [vmem:[%s974_s2 + $0x8] sm:$0xff]  ;;  %vm324_vm2 = vcmask 7168   ;;  %v784_v18 = vmov -inf   ;;  %v785_v23 = vmov 0   ;;  %p721_p12 = scmp.ne.s32.totalorder %s719_s25, %s720_s27 }
  0x16   : > { %313 = vmatpush.msra.mxu0 %v296_v2  ;;  %v330_v6 = vld [vmem:[%s975_s3] sm:$0xff]  ;;  %s636_s7 = sshll.u32 %s272_s17, 4  ;;  %s620_s8 = sshll.u32 %s272_s17, 3  ;;  %v367_v16 = vld [vmem:[%s976_s4 + $0x18] sm:$0xff]  ;;  %v366_v17 = vld [vmem:[%s976_s4 + $0x10] sm:$0xff]  ;;  %325 = vst.msk [vmem:[#allocation3] sm:$0xff] %vm324_vm2, %v784_v18  ;;  %695 = vset.pattern.permute.xlu0 %v785_v23 }
  0x17   : > { %354 = vmatpush.msra.mxu1 %v332_v1  ;;  %s286_s11 = scalar_lea.vmem %s973_s1, %s636_s7  ;;  %v293_v7 = vld [vmem:[%s974_s2] sm:$0xff]  ;;  %s277_s16 = scalar_lea.vmem %s972_s0, %s620_s8  ;;  %380 = vmatpush.msra.mxu2 %v367_v16  ;;  %v365_v19 = vld [vmem:[%s976_s4 + $0x8] sm:$0xff]  ;;  %v786_v24 = vmov 0.0  }
  0x18   : > { %314 = vmatpush.msra.mxu0 %v295_v3  ;;  %v328_v8 = vld [vmem:[%s286_s11] sm:$0xff]  ;;  %v329_v10 = vld [vmem:[%s286_s11 + $0x8] sm:$0xff]  ;;  %697 = vset.pattern.permute.xlu2 %v785_v23  ;;  %327 = vst.msk [vmem:[#allocation5] sm:$0xff] %vm322_vm1, %v786_v24  ;;  %s619_s11 = sshll.u32 %s268_s10, 3  ;;  %s506_s21 = scalar_lea.sflag [#allocation7], %s268_s10 }
  0x19   : > { %355 = vmatpush.msra.mxu1 %v331_v4  ;;  %v292_v9 = vld [vmem:[%s277_s16] sm:$0xff]  ;;  %381 = vmatpush.msra.mxu2 %v366_v17  ;;  %326 = vst.msk [vmem:[#allocation4] sm:$0xff] %vm324_vm2, %v786_v24  ;;  %s270_s16 = scalar_lea.vmem [#allocation6], %s619_s11  ;;  %p722_p13 = pnand %p721_p12, %p857_p4 }
  0x1a   : > { %315 = vmatpush.msra.mxu0 %v294_v5  ;;  %v364_v20 = vld [vmem:[%s976_s4] sm:$0xff]  ;;  %696 = vset.pattern.permute.xlu1 %v785_v23  ;;  %s519_s17 = sshll.u32 %s270_s16, 4  ;;  %s724_s8 = scalar_lea.hbm %s977_s5, 16  ;;  %s520_s17 = int_to_ptr.vmem [resolvable:$true] %s519_s17 }
  0x1b   : > { %356 = vmatpush.msra.mxu1 %v330_v6  ;;  %382 = vmatpush.msra.mxu2 %v365_v19  ;;  %p723_p0 = pneg %p722_p13  ;;  %p726_p2 = scmp.lt.s32.totalorder %s724_s8, %s720_s27 }
  0x1c   : > { %624 = vmatmul.msk.f32.vlgmr.msra.gmra.mxu1 %vm297_vm0, %v328_v8  ;;  %316 = vmatpush.msra.mxu0 %v293_v7 }
  0x1d   : > { %623 = vmatmul.msk.f32.vlgmr.msra.gmra.mxu0 %vm297_vm0, %v292_v9  ;;  %383 = vmatpush.msra.mxu2 %v364_v20  ;;  %v422_v25 = vld [vmem:[#allocation3] sm:$0xff]  ;;  %p727_p3 = por %p726_p2, %p725_p1 }
  0x1e   : > { %626 = vmatmul.msk.f32.vlgmr.msra.gmra.mxu2 %vm297_vm0, %v328_v8 }
  0x1f   : > { %v446_v42 = vld [vmem:[#allocation5] sm:$0xff]  ;;  %p728_p5 = pnand %p727_p3, %p723_p0 }
  0x20   : > { %v438_v38 = vld [vmem:[#allocation4] sm:$0xff] }
  0x24   : > { %625 = vmatmul.msk.f32.gmra.mxu1 %vm297_vm0, %v329_v10 }
  0x26   : > { %627 = vmatmul.msk.f32.gmra.mxu2 %vm297_vm0, %v329_v10 }
  0x99   : > { %v358_v11 = vpop.f32.mrf.mxu1 }
  0x9a   : > { %v318_v12 = vpop.f32.mrf.mxu0 }
  0x9b   : > { %v321_v13 = vmul.f32 0.25, %v318_v12 }
  0x9d   : > { %323 = vst.msk [vmem:[#allocation2] sm:$0xff] %vm322_vm1, %v321_v13 }
  0xa1   : > { %v361_v14 = vpop.f32.mrf.mxu1  ;;  %v385_v31 = vpop.f32.mrf.mxu2 }
  0xa2   : > { %628 = vmatpush.xpose.msk.msra.mxu3 %vm322_vm1, %v361_v14 }
  0xa4   : > { %v391_v15 = vld [vmem:[#allocation2] sm:$0xff] }
  0xa6   : > { %629 = vmatpush.xpose.msk.msra.mxu3 %vm322_vm1, %v358_v11 }
  0xa9   : > { %630 = vmatmul.msk.f32.vlgmr.msra.gmra.mxu3 %vm322_vm1, %v391_v15  ;;  %v388_v32 = vpop.f32.mrf.mxu2 }
  0xaa   : > { %470 = vmatpush.msrb.mxu0 %v388_v32 }
  0xac   : > { %471 = vmatpush.msrb.mxu0 %v385_v31 }
 0x12c   : > { %v419_v21 = vpop.f32.mrf.mxu3 }
 0x12d   : > { %v423_v22 = vsel %vm322_vm1, %v419_v21, -inf }
 0x12e   : > { %424 = vmax.xlane.f32.xlu0 %v423_v22 }
 0x1a1   : > { %v425_v26 = vpop.xlane.xlu0 %424 }
 0x1a2   : > { %v426_v27 = vmax.f32 %v422_v25, %v425_v26 }
 0x1a4   : > { %v427_v28 = vsub.f32 %v422_v25, %v426_v27  ;;  %478 = vst.msk [vmem:[#allocation3] sm:$0xff] %vm324_vm2, %v426_v27  ;;  %432 = vperm.xlu0 %695, %v426_v27  }
 0x1a6   : > { %v428_v29 = vmul.f32 1.442695, %v427_v28 }
 0x1a8   : > { %698 = vpow2.f32 %v428_v29 }
 0x1ae   : > { %v699_v30 = vpop.eup %698 }
 0x1af   : > { %449 = vperm.xlu2 %697, %v699_v30   ;;  %v439_v39 = vmul.f32 %v699_v30, %v438_v38 }
 0x209   : > { %v450_v43 = vpop.permute.xlu2 %449 }
 0x20a   : > { %v452_v44 = vmul.f32 %v450_v43, %v446_v42 }
 0x216   : > { %v433_v33 = vpop.permute.xlu0 %432 }
 0x217   : > { %v435_v34 = vsub.f32 %v419_v21, %v433_v33 }
 0x219   : > { %v436_v35 = vmul.f32 1.442695, %v435_v34 }
 0x21b   : > { %700 = vpow2.f32 %v436_v35 }
 0x221   : > { %v701_v36 = vpop.eup %700 }
 0x222   : > { %631 = vmatmul.msk.f32.vlgmr.msrb.gmra.mxu0 %vm322_vm1, %v701_v36  ;;  %v440_v37 = vsel %vm322_vm1, %v701_v36, 0.0 }
 0x223   : > { %441 = vadd.xlane.f32.xlu1 %v440_v37 }
 0x296   : > { %v442_v40 = vpop.xlane.xlu1 %441 }
 0x297   : > { %v443_v41 = vadd.f32 %v442_v40, %v439_v39 }
 0x299   : > { %445 = vst.msk [vmem:[#allocation4] sm:$0xff] %vm324_vm2, %v443_v41 }
 0x29f   : > { %v473_v45 = vpop.f32.mrf.mxu0 }
 0x2a0   : > { %v476_v46 = vadd.f32 %v473_v45, %v452_v44  ;;  %v483_v47 = vld [vmem:[#allocation4] sm:$0xff] }
 0x2a1   : > { %486 = vperm.xlu1 %696, %v483_v47  }
 0x2a2   : > { %477 = vst.msk [vmem:[#allocation5] sm:$0xff] %vm322_vm1, %v476_v46 }
 0x2a9   : > { %v482_v59 = vld [vmem:[#allocation5] sm:$0xff] }
 0x313   : > { %v487_v48 = vpop.permute.xlu1 %486 }
 0x314   : > { %702 = vrcp.f32 %v487_v48  ;;  %v500_v52 = vand.u32 2147483648, %v487_v48  ;;  %v498_v54 = vand.u32 2147483647, %v487_v48  ;;  %vm494_vm4 = vweird.f32 %v487_v48 }
 0x316   : > { %v501_v56 = vor.u32 1.1754944e-38, %v500_v52  ;;  %vm499_vm6 = vcmp.eq.f32.partialorder %v498_v54, 8.507059e+37 }
 0x31a   : > { %v703_v49 = vpop.eup %702 }
 0x31b   : > { %v490_v50 = vmul.f32 %v703_v49, %v487_v48  ;;  %vm495_vm3 = vweird.f32 %v703_v49 }
 0x31c   : > { %vm496_vm5 = vmor %vm494_vm4, %vm495_vm3 }
 0x31d   : > { %v491_v51 = vsub.f32 1.0, %v490_v50 }
 0x31f   : > { %v492_v53 = vmul.f32 %v703_v49, %v491_v51 }
 0x321   : > { %v493_v55 = vadd.f32 %v703_v49, %v492_v53 }
 0x323   : > { %v497_v57 = vsel %vm496_vm5, %v703_v49, %v493_v55 }
 0x324   : > { %v502_v58 = vsel %vm499_vm6, %v501_v56, %v497_v57 }
 0x325   : > { %v503_v60 = vmul.f32 %v502_v58, %v482_v59 }
 0x327   : > { %504 = vst.msk [vmem:[%s270_s16] sm:$0xff] %vm322_vm1, %v503_v60 }
 0x328   : > { %731 = shalt.err (!%p728_p5)
}
 0x329   : > { %637 = dma.vmem_to_hbm [thread:$0]  (%p857_p4), %s520_s17, 128, %s522_s24, %s506_s21  }
 0x32a PF: > { %p643_p6 = scmp.ge.s32.totalorder %s782_s23, 2  ;;  %s533_s10 = sand.u32 1, %s762_s18  }
 0x32b   : > { %s534_s12 = scalar_lea.sflag [#allocation7], %s533_s10 }
 0x32c   : > { %p640_p7 = pnand %p643_p6, %p864_p8 }
 0x32e   : > { %p641_p9 = pneg %p640_p7 }
 0x330   : > { %757 = dma.done.wait (%p641_p9), %s534_s12, 128  }
 0x331   : > { %759 = vsyncadd (%p641_p9), %s534_s12, 4294967168  ;;  %s18_s23 = sadd.s32 1, %s782_s23   ;;  %s980_s18 = smov %s766_s19 }
 0x332   : > { %p15_p10 = scmp.ge.s32.totalorder %s18_s23, 4   ;;  %s981_s19 = smov %s770_s20 }
 0x333   : > { %s982_s20 = smov %s870_s6  ;;  %s983_s21 = smov %s778_s22 }
 0x334   : > { %s984_s22 = smov %s986_s26  ;;  %17 = sbr.rel (!%p15_p10) target bundleno = 4 (0x4), region = 86 }
 0x339   :  { %540 = vsyncpa [#allocation7], 1 }
 0x33a   :  { %542 = vsyncpa [#allocation7 + $0x1], 1 }

</bundles_post_ra>
